<compile_context>
chip_gen: v6e
topology: v6e:2x2x1
jax: 0.10.0
libtpu: 0.0.40
codegen_flags: <defaults>
</compile_context>

<pallas_src>
import functools

import jax
import jax.numpy as jnp
from jax.experimental import pallas as pl
from jax.experimental.pallas import tpu as pltpu

LANES = 128
NCORES = 2                 # leading "parallel" grid axis (megacore on v7x)
DEFAULT_BLOCK_ROWS = 4096  # 4096 x 128 x 4B = 2 MiB per f32 input block


def _dice_kernel(x_ref, t_ref, o_ref, acc_ref, *,
                 n, block_rows, steps, use_sigmoid, binarize):
    c = pl.program_id(0)  # core-split axis ("parallel")
    j = pl.program_id(1)  # reduction axis ("arbitrary")

    @pl.when(j == 0)
    def _():
        acc_ref[...] = jnp.zeros_like(acc_ref)

    # Global block index this step *intends* to process. For the clamped
    # redundant tail steps of the core split this points past the end of the
    # data and the mask below zeroes the whole block.
    b = c * steps + j

    x = x_ref[...].astype(jnp.float32)
    t = t_ref[...].astype(jnp.float32)

    if use_sigmoid and binarize:
        # sigmoid(x) >= 0.5  <=>  x >= 0  (skips the EUP transcendental)
        xa = (x >= 0.0).astype(jnp.float32)
    elif use_sigmoid:
        xa = jax.nn.sigmoid(x)
    elif binarize:
        xa = (x >= 0.5).astype(jnp.float32)
    else:
        xa = x

    # Mask out the padded / out-of-bounds tail (and fully-clamped blocks).
    # Element indices are int32 -> valid for inputs up to ~2e9 elements.
    row_iota = jax.lax.broadcasted_iota(jnp.int32, (block_rows, LANES), 0)
    lane_iota = jax.lax.broadcasted_iota(jnp.int32, (block_rows, LANES), 1)
    elem = (b * block_rows + row_iota) * LANES + lane_iota
    mask = elem < n

    xa = jnp.where(mask, xa, 0.0)
    tm = jnp.where(mask, t, 0.0)

    # Lane-wise partial sums (sublane reductions + VALU adds); the cheap
    # cross-lane reduction is deferred to plain JAX outside the kernel.
    acc_ref[0:1, :] += jnp.sum(xa * tm, axis=0, keepdims=True)  # intersection
    acc_ref[1:2, :] += jnp.sum(xa, axis=0, keepdims=True)       # sum(inputs)
    acc_ref[2:3, :] += jnp.sum(tm, axis=0, keepdims=True)       # sum(targets)

    @pl.when(j == pl.num_programs(1) - 1)
    def _():
        o_ref[0] = acc_ref[...]


def dice_score(inputs, targets, *, use_sigmoid=True, binarize=True, smooth=1.0,
               block_rows=DEFAULT_BLOCK_ROWS):
    """Pallas TPU implementation of DiceScore.forward. Returns a scalar f32."""
    x = jnp.reshape(inputs, (-1,))
    t = jnp.reshape(targets, (-1,))
    n = x.shape[0]
    assert t.shape[0] == n, "inputs and targets must have the same element count"

    # Pad only when the flat size is not a multiple of 128 (just enough for the
    # lane-dense reshape). Padded elements are masked in-kernel, so the pad
    # value is irrelevant.
    n128 = ((n + LANES - 1) // LANES) * LANES
    if n128 != n:
        x = jnp.pad(x, (0, n128 - n))
        t = jnp.pad(t, (0, n128 - n))

    rows = n128 // LANES
    x2 = x.reshape(rows, LANES)
    t2 = t.reshape(rows, LANES)

    br = min(block_rows, rows)                  # full-dim block for small inputs
    num_blocks = (rows + br - 1) // br
    steps = (num_blocks + NCORES - 1) // NCORES
    grid = (NCORES, steps)

    def in_map(c, j):
        # Clamp so the DMA never starts past the end of the array; clamped
        # (redundant) steps are fully masked inside the kernel.
        return (jnp.minimum(c * steps + j, num_blocks - 1), 0)

    kernel = functools.partial(
        _dice_kernel,
        n=n, block_rows=br, steps=steps,
        use_sigmoid=use_sigmoid, binarize=binarize)

    partials = pl.pallas_call(
        kernel,
        out_shape=jax.ShapeDtypeStruct((NCORES, 3, LANES), jnp.float32),
        grid_spec=pltpu.PrefetchScalarGridSpec(
            num_scalar_prefetch=0,
            grid=grid,
            in_specs=[
                pl.BlockSpec((br, LANES), in_map),
                pl.BlockSpec((br, LANES), in_map),
            ],
            out_specs=pl.BlockSpec((1, 3, LANES), lambda c, j: (c, 0, 0)),
            scratch_shapes=[pltpu.VMEM((3, LANES), jnp.float32)],
        ),
        compiler_params=pltpu.CompilerParams(
            dimension_semantics=("parallel", "arbitrary"),
            vmem_limit_bytes=32 * 1024 * 1024,
        ),
    )(x2, t2)

    # Tiny epilogue in plain JAX: cross-lane/core reduction + dice formula.
    sums = jnp.sum(partials, axis=(0, 2))  # [intersection, sum(inputs), sum(targets)]
    return (2.0 * sums[0] + smooth) / (sums[1] + sums[2] + smooth)


def _dice_ref(inputs, targets, *, use_sigmoid=True, binarize=True, smooth=1.0):
    """Pure-JAX reference matching the PyTorch module."""
    x = inputs.astype(jnp.float32)
    if use_sigmoid:
        x = jax.nn.sigmoid(x)
    if binarize:
        x = (x >= 0.5).astype(jnp.float32)
    x = x.reshape(-1)
    t = targets.reshape(-1).astype(jnp.float32)
    inter = jnp.sum(x * t)
    return (2.0 * inter + smooth) / (jnp.sum(x) + jnp.sum(t) + smooth)


if __name__ == "__main__":
    key = jax.random.PRNGKey(0)
    k1, k2, k3, k4 = jax.random.split(key, 4)

    # Case 1: raw logits NCHW (N=2, C=1 single-class, H=W=16), binary targets.
    inputs = jax.random.normal(k1, (2, 1, 16, 16), dtype=jnp.float32)
    targets = (jax.random.uniform(k2, (2, 1, 16, 16)) > 0.5).astype(jnp.float32)
    out = jax.block_until_ready(dice_score(inputs, targets))
    ref = _dice_ref(inputs, targets)
    assert jnp.allclose(out, ref, atol=1e-5, rtol=1e-5), (out, ref)

    # Case 2: ragged size (exercises tail masking) and the non-binarized path.
    inputs2 = jax.random.normal(k3, (3, 1, 7, 11), dtype=jnp.float32)
    targets2 = (jax.random.uniform(k4, (3, 1, 7, 11)) > 0.5).astype(jnp.float32)
    out2 = jax.block_until_ready(
        dice_score(inputs2, targets2, use_sigmoid=True, binarize=False))
    ref2 = _dice_ref(inputs2, targets2, use_sigmoid=True, binarize=False)
    assert jnp.allclose(out2, ref2, atol=1e-5, rtol=1e-5), (out2, ref2)

    print("KERNEL_OK")
</pallas_src>

<mosaic_0001>
module attributes {stable_mosaic.version = 11 : i64} {
  func.func @_dice_kernel(%arg0: i32, %arg1: i32, %arg2: memref<4x128xf32, #tpu.memory_space<vmem>>, %arg3: memref<4x128xf32, #tpu.memory_space<vmem>>, %arg4: memref<1x3x128xf32, #tpu.memory_space<vmem>>, %arg5: memref<3x128xf32, #tpu.memory_space<vmem>>) attributes {dimension_semantics = [#tpu.dimension_semantics<parallel>, #tpu.dimension_semantics<arbitrary>], iteration_bounds = array<i64: 2, 1>, scalar_prefetch = 0 : i64, scratch_operands = 1 : i64, tpu.core_type = #tpu.core_type<tc>, window_params = [{transform_indices = @transform_0, window_bounds = array<i64: 4, 128>}, {transform_indices = @transform_1, window_bounds = array<i64: 4, 128>}, {transform_indices = @transform_2, window_bounds = array<i64: 1, 3, 128>}]} {
    %c0_i32 = arith.constant 0 : i32
    %0 = arith.cmpi eq, %arg1, %c0_i32 : i32
    %1 = arith.extui %0 : i1 to i32
    %c0_i32_0 = arith.constant 0 : i32
    %2 = arith.cmpi ne, %1, %c0_i32_0 : i32
    scf.if %2 {
      %cst_21 = arith.constant 0.000000e+00 : f32
      %44 = vector.broadcast %cst_21 : f32 to vector<3x128xf32>
      %c0_22 = arith.constant 0 : index
      %c0_23 = arith.constant 0 : index
      %45 = vector.load %arg5[%c0_22, %c0_23] : memref<3x128xf32, #tpu.memory_space<vmem>>, vector<3x128xf32>
      tpu.vector_store %arg5[%c0_22, %c0_23], %44 {strides = array<i32>} : memref<3x128xf32, #tpu.memory_space<vmem>>, vector<3x128xf32>,
    } else {
    }
    %c1_i32 = arith.constant 1 : i32
    %3 = arith.muli %arg0, %c1_i32 : i32
    %4 = arith.addi %3, %arg1 : i32
    %c0 = arith.constant 0 : index
    %c0_1 = arith.constant 0 : index
    %5 = vector.load %arg2[%c0, %c0_1] : memref<4x128xf32, #tpu.memory_space<vmem>>, vector<4x128xf32>
    %c0_2 = arith.constant 0 : index
    %c0_3 = arith.constant 0 : index
    %6 = vector.load %arg3[%c0_2, %c0_3] : memref<4x128xf32, #tpu.memory_space<vmem>>, vector<4x128xf32>
    %cst = arith.constant 0.000000e+00 : f32
    %7 = vector.broadcast %cst : f32 to vector<4x128xf32>
    %8 = arith.cmpf oge, %5, %7 : vector<4x128xf32>
    %9 = arith.extui %8 : vector<4x128xi1> to vector<4x128xi32>
    %10 = arith.sitofp %9 : vector<4x128xi32> to vector<4x128xf32>
    %11 = tpu.iota {dimensions = array<i32: 0>} : vector<4x128xi32>
    %12 = tpu.iota {dimensions = array<i32: 1>} : vector<4x128xi32>
    %c4_i32 = arith.constant 4 : i32
    %13 = arith.muli %4, %c4_i32 : i32
    %14 = vector.broadcast %13 : i32 to vector<4x128xi32>
    %15 = arith.addi %14, %11 : vector<4x128xi32>
    %c128_i32 = arith.constant 128 : i32
    %16 = vector.broadcast %c128_i32 : i32 to vector<4x128xi32>
    %17 = arith.muli %15, %16 : vector<4x128xi32>
    %18 = arith.addi %17, %12 : vector<4x128xi32>
    %c512_i32 = arith.constant 512 : i32
    %19 = vector.broadcast %c512_i32 : i32 to vector<4x128xi32>
    %20 = arith.cmpi slt, %18, %19 : vector<4x128xi32>
    %cst_4 = arith.constant 0.000000e+00 : f32
    %21 = vector.broadcast %cst_4 : f32 to vector<4x128xf32>
    %22 = arith.select %20, %10, %21 : vector<4x128xi1>, vector<4x128xf32>
    %cst_5 = arith.constant 0.000000e+00 : f32
    %23 = vector.broadcast %cst_5 : f32 to vector<4x128xf32>
    %24 = arith.select %20, %6, %23 : vector<4x128xi1>, vector<4x128xf32>
    %c0_6 = arith.constant 0 : index
    %c0_7 = arith.constant 0 : index
    %25 = vector.load %arg5[%c0_6, %c0_7] : memref<3x128xf32, #tpu.memory_space<vmem>>, vector<1x128xf32>
    %26 = arith.mulf %22, %24 : vector<4x128xf32>
    %cst_8 = arith.constant dense<0.000000e+00> : vector<128xf32>
    %27 = vector.multi_reduction <add>, %26, %cst_8 [0] : vector<4x128xf32> to vector<128xf32>
    %28 = vector.shape_cast %27 : vector<128xf32> to vector<1x128xf32>
    %29 = arith.addf %25, %28 : vector<1x128xf32>
    %c0_9 = arith.constant 0 : index
    %c0_10 = arith.constant 0 : index
    %30 = vector.load %arg5[%c0_9, %c0_10] : memref<3x128xf32, #tpu.memory_space<vmem>>, vector<1x128xf32>
    tpu.vector_store %arg5[%c0_9, %c0_10], %29 {strides = array<i32>} : memref<3x128xf32, #tpu.memory_space<vmem>>, vector<1x128xf32>,
    %c1 = arith.constant 1 : index
    %c0_11 = arith.constant 0 : index
    %31 = vector.load %arg5[%c1, %c0_11] : memref<3x128xf32, #tpu.memory_space<vmem>>, vector<1x128xf32>
    %cst_12 = arith.constant dense<0.000000e+00> : vector<128xf32>
    %32 = vector.multi_reduction <add>, %22, %cst_12 [0] : vector<4x128xf32> to vector<128xf32>
    %33 = vector.shape_cast %32 : vector<128xf32> to vector<1x128xf32>
    %34 = arith.addf %31, %33 : vector<1x128xf32>
    %c1_13 = arith.constant 1 : index
    %c0_14 = arith.constant 0 : index
    %35 = vector.load %arg5[%c1_13, %c0_14] : memref<3x128xf32, #tpu.memory_space<vmem>>, vector<1x128xf32>
    tpu.vector_store %arg5[%c1_13, %c0_14], %34 {strides = array<i32>} : memref<3x128xf32, #tpu.memory_space<vmem>>, vector<1x128xf32>,
    %c2 = arith.constant 2 : index
    %c0_15 = arith.constant 0 : index
    %36 = vector.load %arg5[%c2, %c0_15] : memref<3x128xf32, #tpu.memory_space<vmem>>, vector<1x128xf32>
    %cst_16 = arith.constant dense<0.000000e+00> : vector<128xf32>
    %37 = vector.multi_reduction <add>, %24, %cst_16 [0] : vector<4x128xf32> to vector<128xf32>
    %38 = vector.shape_cast %37 : vector<128xf32> to vector<1x128xf32>
    %39 = arith.addf %36, %38 : vector<1x128xf32>
    %c2_17 = arith.constant 2 : index
    %c0_18 = arith.constant 0 : index
    %40 = vector.load %arg5[%c2_17, %c0_18] : memref<3x128xf32, #tpu.memory_space<vmem>>, vector<1x128xf32>
    tpu.vector_store %arg5[%c2_17, %c0_18], %39 {strides = array<i32>} : memref<3x128xf32, #tpu.memory_space<vmem>>, vector<1x128xf32>,
    %c0_i32_19 = arith.constant 0 : i32
    %41 = arith.cmpi eq, %arg1, %c0_i32_19 : i32
    %42 = arith.extui %41 : i1 to i32
    %c0_i32_20 = arith.constant 0 : i32
    %43 = arith.cmpi ne, %42, %c0_i32_20 : i32
    scf.if %43 {
      %c0_21 = arith.constant 0 : index
      %c0_22 = arith.constant 0 : index
      %44 = vector.load %arg5[%c0_21, %c0_22] : memref<3x128xf32, #tpu.memory_space<vmem>>, vector<3x128xf32>
      %c0_23 = arith.constant 0 : index
      %c0_24 = arith.constant 0 : index
      %c0_25 = arith.constant 0 : index
      %45 = vector.load %arg4[%c0_23, %c0_24, %c0_25] : memref<1x3x128xf32, #tpu.memory_space<vmem>>, vector<1x3x128xf32>
      %46 = vector.shape_cast %45 : vector<1x3x128xf32> to vector<3x128xf32>
      %47 = vector.shape_cast %44 : vector<3x128xf32> to vector<1x3x128xf32>
      tpu.vector_store %arg4[%c0_23, %c0_24, %c0_25], %47 {strides = array<i32>} : memref<1x3x128xf32, #tpu.memory_space<vmem>>, vector<1x3x128xf32>,
    } else {
    }
    return
  }
  func.func @transform_0(%arg0: i32, %arg1: i32) -> (i32, i32) {
    %c1_i32 = arith.constant 1 : i32
    %0 = arith.muli %arg0, %c1_i32 : i32
    %1 = arith.addi %0, %arg1 : i32
    %c0_i32 = arith.constant 0 : i32
    %2 = arith.minsi %1, %c0_i32 : i32
    %c0_i32_0 = arith.constant 0 : i32
    %c0_i32_1 = arith.constant 0 : i32
    return %2, %c0_i32_0 : i32, i32
  }
  func.func @transform_1(%arg0: i32, %arg1: i32) -> (i32, i32) {
    %c1_i32 = arith.constant 1 : i32
    %0 = arith.muli %arg0, %c1_i32 : i32
    %1 = arith.addi %0, %arg1 : i32
    %c0_i32 = arith.constant 0 : i32
    %2 = arith.minsi %1, %c0_i32 : i32
    %c0_i32_0 = arith.constant 0 : i32
    %c0_i32_1 = arith.constant 0 : i32
    return %2, %c0_i32_0 : i32, i32
  }
  func.func @transform_2(%arg0: i32, %arg1: i32) -> (i32, i32, i32) {
    %c0_i32 = arith.constant 0 : i32
    %c0_i32_0 = arith.constant 0 : i32
    %c0_i32_1 = arith.constant 0 : i32
    return %arg0, %c0_i32, %c0_i32_0 : i32, i32, i32
  }
}

</mosaic_0001>

<bundles_post_ra>
// kernel: tpu_custom_call.1
= control target key start
LH: loop header
LB: loop body
LE: loop exit
PB: predicated region body
PF: predicated region fallthrough
CT: control target
= control target key end

     0   :  { %7 = vsyncpa [#allocation4], 0  ;;  %s708_s0 = inlined_call_operand.hbm [shape: f32[4,128], index: 0, kind: input, shape index: {}]   ;;  %s709_s1 = inlined_call_operand.hbm [shape: f32[4,128], index: 1, kind: input, shape index: {}]   ;;  %s710_s2 = inlined_call_operand.vmem [shape: f32[2,3,128], index: 2, kind: output, shape index: {}]  }
   0x1   :  { %9 = vsyncpa [#allocation4 + $0x1], 0 }
   0x2   :  { %10 = vsyncpa [#allocation6], 0 }
   0x3   :  { %12 = vsyncpa [#allocation6 + $0x1], 0  ;;  %s592_s9 = smov 0   ;;  %s594_s10 = smov 0  }
   0x4   :  { %s596_s11 = smov 0   ;;  %s598_s12 = smov 0  }
   0x5   :  { %s600_s13 = smov 0  }
   0x6 LB: > { %s388_s14 = sadd.s32 4294967295, %s572_s13   ;;  %s30_s15 = sadd.s32 1, %s568_s12  ;;  %s572_s13 = sphi %s600_s13, %s18_s13   ;;  %s568_s12 = sphi %s598_s12, %s721_s12   ;;  %s564_s11 = sphi %s596_s11, %s720_s11   ;;  %s560_s10 = sphi %s594_s10, %s698_s10   ;;  %s556_s9 = sphi %s592_s9, %s719_s9  }
   0x7   : > { %p32_p0 = scmp.ge.s32.totalorder %s30_s15, 2  ;;  %p553_p1 = scmp.ne.s32.totalorder %s560_s10, 0 }
   0x8   : > { %p51_p2 = scmp.eq.s32.totalorder %s572_s13, 0  ;;  %p56_p3 = scmp.ne.s32.totalorder %s560_s10, %s556_s9 }
   0x9   : > { %s723_s15 = smov (%p32_p0, %s30_s15), 0  ;;  %p57_p4 = scmp.eq.s32.totalorder %s388_s14, 0 }
   0xa   : > { %p52_p5 = por %p553_p1, %p51_p2  ;;  %p415_p7 = scmp.lt.s32.totalorder %s572_s13, 2 }
   0xb   : > { %p622_p6 = por %p57_p4, %p56_p3  ;;  %s574_s17 = smov [#allocation3]  }
   0xc   : > { %s152_s18 = sshll.u32 %s574_s17, 4  ;;  %p627_p8 = pnand %p415_p7, %p52_p5  ;;  %s153_s18 = int_to_ptr.vmem [resolvable:$true] %s152_s18 }
   0xd   : > { %s712_s16 = scalar_select %p622_p6, 1, 0 }
   0xe   : > { %s465_s22 = scalar_lea.hbm %s708_s0, 64  ;;  %p467_p12 = pneg %p627_p8 }
   0xf   : > { %p466_p11 = scmp.ne.s32.totalorder %s708_s0, %s465_s22  ;;  %p472_p1 = scmp.lt.s32.totalorder %s465_s22, %s465_s22 }
  0x11   : > { %p468_p13 = pnand %p467_p12, %p466_p11 }
  0x13   : > { %p469_p0 = pneg %p468_p13 }
  0x15   : > { %p474_p2 = pnand %p472_p1, %p469_p0 }
  0x17   : > { %477 = shalt.err (!%p474_p2)
}
  0x18   : > { %s478_s25 = scalar_lea.vmem %s153_s18, 64  ;;  %s485_s26 = scalar_lea.vmem %s153_s18, 128 }
  0x19   : > { %p479_p3 = scmp.ne.s32.totalorder %s153_s18, %s478_s25  ;;  %p486_p7 = scmp.lt.s32.totalorder %s153_s18, %s153_s18 }
  0x1a   : > { %p487_p9 = scmp.lt.s32.totalorder %s485_s26, %s478_s25 }
  0x1b   : > { %p481_p4 = pnand %p479_p3, %p467_p12 }
  0x1c   : > { %p488_p10 = por %p487_p9, %p486_p7 }
  0x1d   : > { %p482_p5 = pneg %p481_p4 }
  0x1f   : > { %p489_p6 = pnand %p488_p10, %p482_p5 }
  0x21   : > { %492 = shalt.err (!%p489_p6)
}
  0x22   : > { %411 = dma.hbm_to_vmem [thread:$0]  (!%p627_p8), %s708_s0, 64, %s153_s18, [#allocation4]  }
  0x23   : > { %p714_p11 = scmp.lt.s32.totalorder %s572_s13, 3  ;;  %p715_p13 = scmp.ge.s32.totalorder %s572_s13, 1 }
  0x24   : > { %s575_s30 = smov [#allocation5]   ;;  %s493_s6 = scalar_lea.hbm %s709_s1, 64 }
  0x25   : > { %p656_p0 = pnand %p715_p13, %p714_p11  ;;  %s173_s3 = sshll.u32 %s575_s30, 4  ;;  %s174_s3 = int_to_ptr.vmem [resolvable:$true] %s173_s3 }
  0x26   : > { %p494_p6 = scmp.ne.s32.totalorder %s709_s1, %s493_s6  ;;  %p500_p1 = scmp.lt.s32.totalorder %s493_s6, %s493_s6 }
  0x27   : > { %s716_s29 = scalar_select %p656_p0, 1, 0 }
  0x28   : > { %p496_p9 = pnand %p494_p6, %p467_p12 }
  0x2a   : > { %p497_p10 = pneg %p496_p9 }
  0x2c   : > { %p502_p2 = pnand %p500_p1, %p497_p10 }
  0x2e   : > { %505 = shalt.err (!%p502_p2)
}
  0x2f   : > { %s506_s9 = scalar_lea.vmem %s174_s3, 64  ;;  %s513_s14 = scalar_lea.vmem %s174_s3, 128 }
  0x30   : > { %p507_p3 = scmp.ne.s32.totalorder %s174_s3, %s506_s9  ;;  %p514_p7 = scmp.lt.s32.totalorder %s174_s3, %s174_s3 }
  0x31   : > { %p515_p11 = scmp.lt.s32.totalorder %s513_s14, %s506_s9 }
  0x32   : > { %p509_p4 = pnand %p507_p3, %p467_p12 }
  0x33   : > { %p516_p13 = por %p515_p11, %p514_p7 }
  0x34   : > { %p510_p5 = pneg %p509_p4 }
  0x36   : > { %p517_p0 = pnand %p516_p13, %p510_p5 }
  0x38   : > { %520 = shalt.err (!%p517_p0)
}
  0x39   : > { %414 = dma.hbm_to_vmem [thread:$0]  (!%p627_p8), %s709_s1, 64, %s174_s3, [#allocation6]  }
  0x3a   : > { %p717_p6 = scmp.ne.s32.totalorder %s716_s29, 0 }
  0x3b   : > { %s184_s20 = sand.u32 (!%p717_p6), 1, %s560_s10   ;;  %p718_p12 = scmp.ne.s32.totalorder (!%p717_p6), %s712_s16, 0 }
  0x3c   : > { %182 = sbr.rel (%p717_p6) target bundleno = 106 (0x6a), region = 28  ;;  %s397_s21 = sshll.u32 (!%p717_p6), %s184_s20, 2 }
  0x3d   : > { %s185_s22 = scalar_lea.sflag (!%p717_p6), [#allocation4], %s184_s20  ;;  %s188_s23 = scalar_lea.vmem (!%p717_p6), [#allocation3], %s397_s21 }
  0x41   : > { %546 = dma.done.wait (%p718_p12), %s185_s22, 64  }
  0x42   : > { %548 = vsyncadd (%p718_p12), %s185_s22, 4294967232  ;;  %s194_s19 = scalar_lea.sflag [#allocation6], %s184_s20  ;;  %s197_s24 = scalar_lea.vmem [#allocation5], %s397_s21 }
  0x43   : > { %550 = dma.done.wait (%p718_p12), %s194_s19, 64  }
  0x44   : > { %552 = vsyncadd (%p718_p12), %s194_s19, 4294967232  ;;  %v243_v0 = vlaneseq  ;;  %s401_s25 = sshll.u32 %s564_s11, 2  ;;  %v576_v1 = vmov 0.0   ;;  %v238_v7 = vld [vmem:[%s188_s23] sm:$0xf]  ;;  %vm257_vm1 = vcmask 1043456  }
  0x45   : > { %236 = vst [vmem:[#allocation2] sm:$0x7] %v576_v1  ;;  %v248_v2 = vstv %s401_s25  ;;  %v239_v8 = vld [vmem:[%s197_s24] sm:$0xf]  ;;  %vm240_vm0 = vcmp.ge.f32.partialorder %v238_v7, 0.0  ;;  %p228_p8 = scmp.lt.s32.totalorder %s564_s11, 1 }
  0x46   : > { %v244_v3 = vshrl.u32 %v243_v0, 7  ;;  %v246_v4 = vand.u32 127, %v243_v0  ;;  %v400_v10 = vsel %vm240_vm0, 1.0, %v576_v1 }
  0x47   : > { %s725_s11 = smov (!%p228_p8, %s564_s11), 1 }
  0x48   : > { %v249_v5 = vadd.s32 %v248_v2, %v244_v3  ;;  %s399_s16 = sshll.u32 %s725_s11, 2 }
  0x49   : > { %s231_s28 = scalar_lea.vmem %s710_s2, %s399_s16 }
  0x4a   : > { %v250_v6 = vmul.u32 128, %v249_v5 }
  0x4c   : > { %v251_v9 = vadd.s32 %v250_v6, %v246_v4  ;;  %v267_v31 = vld [vmem:[#allocation2 + $0x1] sm:$0x1]  ;;  %v277_v32 = vld [vmem:[#allocation2 + $0x2] sm:$0x1]  ;;  %v255_v36 = vld [vmem:[#allocation2] sm:$0x1] }
  0x4e   : > { %vm252_vm2 = vcmp.lt.s32.totalorder %v251_v9, 512 }
  0x4f   : > { %v253_v11 = vsel %vm252_vm2, %v400_v10, 0.0  ;;  %v254_v12 = vsel %vm252_vm2, %v239_v8, 0.0 }
  0x50   : > { %v256_v13 = vmul.f32 %v254_v12, %v253_v11  ;;  %v268_v14 = vsel %vm257_vm1, %v253_v11, 0.0  ;;  %v278_v15 = vsel %vm257_vm1, %v254_v12, 0.0 }
  0x51   : > { %v269_v16 = vrot.slane %v268_v14, 4  ;;  %v279_v17 = vrot.slane %v278_v15, 4 }
  0x52   : > { %v258_v18 = vsel %vm257_vm1, %v256_v13, 0.0 }
  0x53   : > { %v259_v19 = vrot.slane %v258_v18, 4  ;;  %v270_v20 = vadd.f32 %v269_v16, %v268_v14  ;;  %v280_v21 = vadd.f32 %v279_v17, %v278_v15 }
  0x55   : > { %v260_v22 = vadd.f32 %v259_v19, %v258_v18  ;;  %v271_v23 = vrot.slane %v270_v20, 2  ;;  %v281_v24 = vrot.slane %v280_v21, 2 }
  0x57   : > { %v261_v25 = vrot.slane %v260_v22, 2  ;;  %v272_v26 = vadd.f32 %v271_v23, %v270_v20  ;;  %v282_v27 = vadd.f32 %v281_v24, %v280_v21 }
  0x59   : > { %v262_v28 = vadd.f32 %v261_v25, %v260_v22  ;;  %v273_v29 = vrot.slane %v272_v26, 1  ;;  %v283_v30 = vrot.slane %v282_v27, 1 }
  0x5b   : > { %v263_v33 = vrot.slane %v262_v28, 1  ;;  %v274_v34 = vadd.f32 %v273_v29, %v272_v26  ;;  %v284_v35 = vadd.f32 %v283_v30, %v282_v27 }
  0x5d   : > { %v264_v37 = vadd.f32 %v263_v33, %v262_v28  ;;  %v275_v38 = vadd.f32 %v274_v34, %v267_v31  ;;  %v285_v39 = vadd.f32 %v284_v35, %v277_v32 }
  0x5f   : > { %v265_v40 = vadd.f32 %v264_v37, %v255_v36  ;;  %276 = vst [vmem:[#allocation2 + $0x1] sm:$0x1] %v275_v38  ;;  %286 = vst [vmem:[#allocation2 + $0x2] sm:$0x1] %v285_v39 }
  0x61   : > { %266 = vst [vmem:[#allocation2] sm:$0x1] %v265_v40 }
  0x68   : > { %v290_v41 = vld [vmem:[#allocation2] sm:$0x7] }
  0x69   : > { %291 = vst [vmem:[%s231_s28] sm:$0x7] %v290_v41 }
  0x6a PF: > { %s18_s13 = sadd.s32 1, %s572_s13   ;;  %s719_s9 = smov %s560_s10 }
  0x6b   : > { %p15_p0 = scmp.ge.s32.totalorder %s18_s13, 4   ;;  %s698_s10 = smov 0  }
  0x6c   : > { %s720_s11 = smov %s568_s12  ;;  %s721_s12 = smov %s723_s15 }
  0x6d   :  { %17 = sbr.rel (!%p15_p0) target bundleno = 6 (0x6), region = 89 }
  0x72   :  { %311 = vsyncpa [#allocation4], 1 }
  0x73   :  { %313 = vsyncpa [#allocation4 + $0x1], 1 }
  0x74   :  { %314 = vsyncpa [#allocation6], 1 }
  0x75   :  { %316 = vsyncpa [#allocation6 + $0x1], 1 }

</bundles_post_ra>
